<compile_context>
chip_gen: v7x
topology: tpu7x:2x2x1
jax: 0.10.0
libtpu: 0.0.40
codegen_flags: <defaults>
</compile_context>

<pallas_src>
import functools

import jax
import jax.numpy as jnp
import numpy as np
from jax.experimental import pallas as pl
from jax.experimental.pallas import tpu as pltpu


def _attention_kernel(enc_ref, att2_ref, we_ref, be_ref, wf_ref, bf_ref,
                      awe_ref, alpha_ref, *, matmul_dtype):
    Bt, P, E = enc_ref.shape
    A = we_ref.shape[1]

    enc = enc_ref[...]                                  # (Bt, P, E)  (f32 or bf16)
    enc_m = enc.astype(matmul_dtype)

    # --- att1 = encoder_att(encoder_out): one lane-dense 2D matmul on the MXU ---------
    att1 = jnp.dot(enc_m.reshape(Bt * P, E),
                   we_ref[...].astype(matmul_dtype),
                   preferred_element_type=jnp.float32)  # (Bt*P, A) f32 accumulation
    att1 = att1 + be_ref[...]                           # + encoder_att bias, (1, A)
    att1 = att1.reshape(Bt, P, A)

    # --- relu(att1 + att2), att2 precomputed in the wrapper, shape (Bt, 1, A) ---------
    h = jnp.maximum(att1 + att2_ref[...], 0.0)          # (Bt, P, A) f32

    # --- full_att: lane-dense scores (Bt, P): contract A via multiply + lane reduce ---
    scores = jnp.sum(h * wf_ref[...], axis=-1) + bf_ref[...]    # (Bt, P) f32

    # --- softmax over pixels (lane axis), all in f32 -----------------------------------
    m = jnp.max(scores, axis=-1, keepdims=True)         # (Bt, 1)
    e = jnp.exp(scores - m)                             # (Bt, P)
    denom = jnp.sum(e, axis=-1, keepdims=True)          # (Bt, 1)
    if jnp.dtype(matmul_dtype) == jnp.dtype(jnp.float32):
        alpha = e / denom                               # exact path for strict f32 check
    else:
        alpha = e * pl.reciprocal(denom, approx=True)   # EUP reciprocal on the fast path

    # --- attention-weighted encoding: contract P on the MXU (batched matmul) -----------
    awe = jnp.einsum('bqp,bpe->bqe',
                     alpha[:, None, :].astype(matmul_dtype), enc_m,
                     preferred_element_type=jnp.float32)        # (Bt, 1, E) f32

    awe_ref[...] = awe.astype(awe_ref.dtype)            # (Bt, 1, E), lane-dense
    alpha_ref[...] = alpha.astype(alpha_ref.dtype)      # (Bt, P),   lane-dense


def attention_forward(encoder_out, decoder_hidden, params, *,
                      matmul_dtype=jnp.float32, batch_tile=None):
    """encoder_out: (B, P, E) f32, decoder_hidden: (B, D) f32.

    matmul_dtype: dtype fed to the MXU (jnp.bfloat16 recommended on v5e/v6e/v7x);
    accumulation, softmax and outputs stay float32.
    """
    B, P, E = encoder_out.shape
    A = params["we"].shape[1]

    if batch_tile is None:
        batch_tile = 8 if B % 8 == 0 else B
    Bt = min(batch_tile, B)
    assert B % Bt == 0, "batch must be divisible by the batch tile"
    grid = (B // Bt,)

    # Hoist the decoder projection out of the kernel: one well-shaped (B, D) @ (D, A)
    # matmul in XLA instead of a degenerate M=1 matmul per grid step.
    att2 = jnp.dot(decoder_hidden.astype(matmul_dtype),
                   params["wd"].astype(matmul_dtype),
                   preferred_element_type=jnp.float32) + params["bd"]   # (B, A) f32
    att2 = att2[:, None, :]                                             # (B, 1, A)

    enc = encoder_out.astype(matmul_dtype)
    we = params["we"].astype(matmul_dtype)
    be = params["be"].reshape(1, A).astype(jnp.float32)
    wf = params["wf"].reshape(1, 1, A).astype(jnp.float32)   # full_att weight as a lane row
    bf = params["bf"].reshape(1, 1).astype(jnp.float32)

    kernel = functools.partial(_attention_kernel, matmul_dtype=matmul_dtype)

    awe3, alpha = pl.pallas_call(
        kernel,
        out_shape=(
            jax.ShapeDtypeStruct((B, 1, E), jnp.float32),   # attention_weighted_encoding
            jax.ShapeDtypeStruct((B, P), jnp.float32),      # alpha (lane-dense, last dim = P)
        ),
        grid_spec=pltpu.PrefetchScalarGridSpec(
            num_scalar_prefetch=0,
            grid=grid,
            in_specs=[
                pl.BlockSpec((Bt, P, E), lambda b: (b, 0, 0)),   # encoder_out tile
                pl.BlockSpec((Bt, 1, A), lambda b: (b, 0, 0)),   # precomputed att2 tile
                pl.BlockSpec((E, A),     lambda b: (0, 0)),      # W_encoder_att (constant)
                pl.BlockSpec((1, A),     lambda b: (0, 0)),      # b_encoder_att (constant)
                pl.BlockSpec((1, 1, A),  lambda b: (0, 0, 0)),   # W_full_att row (constant)
                pl.BlockSpec((1, 1),     lambda b: (0, 0)),      # b_full_att (constant)
            ],
            out_specs=[
                pl.BlockSpec((Bt, 1, E), lambda b: (b, 0, 0)),
                pl.BlockSpec((Bt, P),    lambda b: (b, 0)),
            ],
        ),
        compiler_params=pltpu.CompilerParams(
            dimension_semantics=("parallel",)),   # batch tiles are independent (v7x: 2 TCs)
    )(enc, att2, we, be, wf, bf)

    return awe3[:, 0, :], alpha


def attention_reference(encoder_out, decoder_hidden, params):
    att1 = encoder_out @ params["we"] + params["be"]
    att2 = decoder_hidden @ params["wd"] + params["bd"]
    h = jnp.maximum(att1 + att2[:, None, :], 0.0)
    att = (h @ params["wf"] + params["bf"])[..., 0]
    alpha = jax.nn.softmax(att, axis=1)
    awe = (encoder_out * alpha[..., None]).sum(axis=1)
    return awe, alpha


if __name__ == "__main__":
    # Small shapes consistent with the module's forward signature.
    # B=16 so the batch-tiled grid (Bt=8) has 2 steps.
    B, P, E, D, A = 16, 16, 32, 32, 32

    key = jax.random.PRNGKey(0)
    k = jax.random.split(key, 8)

    encoder_out = jax.random.normal(k[0], (B, P, E), dtype=jnp.float32)
    decoder_hidden = jax.random.normal(k[1], (B, D), dtype=jnp.float32)

    # Deterministic parameter init (stored as (in, out) for x @ W).
    params = {
        "we": jax.random.normal(k[2], (E, A), dtype=jnp.float32) * 0.1,
        "be": jax.random.normal(k[3], (1, A), dtype=jnp.float32) * 0.1,
        "wd": jax.random.normal(k[4], (D, A), dtype=jnp.float32) * 0.1,
        "bd": jax.random.normal(k[5], (1, A), dtype=jnp.float32) * 0.1,
        "wf": jax.random.normal(k[6], (A, 1), dtype=jnp.float32) * 0.1,
        "bf": jax.random.normal(k[7], (1, 1), dtype=jnp.float32) * 0.1,
    }

    awe_ref, alpha_ref = attention_reference(encoder_out, decoder_hidden, params)

    # f32 path: strict check against the reference semantics.
    awe, alpha = attention_forward(encoder_out, decoder_hidden, params,
                                   matmul_dtype=jnp.float32)
    jax.block_until_ready((awe, alpha))
    np.testing.assert_allclose(np.asarray(awe), np.asarray(awe_ref), rtol=1e-4, atol=1e-4)
    np.testing.assert_allclose(np.asarray(alpha), np.asarray(alpha_ref), rtol=1e-4, atol=1e-4)

    # bf16 MXU fast path (recommended on v5e/v6e/v7x): matmul inputs bf16, f32 accumulation.
    awe_bf, alpha_bf = attention_forward(encoder_out, decoder_hidden, params,
                                         matmul_dtype=jnp.bfloat16)
    jax.block_until_ready((awe_bf, alpha_bf))
    np.testing.assert_allclose(np.asarray(awe_bf), np.asarray(awe_ref), rtol=2e-2, atol=2e-2)
    np.testing.assert_allclose(np.asarray(alpha_bf), np.asarray(alpha_ref), rtol=2e-2, atol=2e-2)

    print("KERNEL_OK")
</pallas_src>

<mosaic_0001>
module attributes {stable_mosaic.version = 11 : i64} {
  func.func @_attention_kernel(%arg0: i32, %arg1: memref<8x16x32xf32, #tpu.memory_space<vmem>>, %arg2: memref<8x1x32xf32, #tpu.memory_space<vmem>>, %arg3: memref<32x32xf32, #tpu.memory_space<vmem>>, %arg4: memref<1x32xf32, #tpu.memory_space<vmem>>, %arg5: memref<1x1x32xf32, #tpu.memory_space<vmem>>, %arg6: memref<1x1xf32, #tpu.memory_space<vmem>>, %arg7: memref<8x1x32xf32, #tpu.memory_space<vmem>>, %arg8: memref<8x16xf32, #tpu.memory_space<vmem>>) attributes {dimension_semantics = [#tpu.dimension_semantics<parallel>], iteration_bounds = array<i64: 2>, scalar_prefetch = 0 : i64, scratch_operands = 0 : i64, tpu.core_type = #tpu.core_type<tc>, window_params = [{transform_indices = @transform_0, window_bounds = array<i64: 8, 16, 32>}, {transform_indices = @transform_1, window_bounds = array<i64: 8, 1, 32>}, {pipeline_mode = #tpu.pipeline_mode<synchronous>, transform_indices = @transform_2, window_bounds = array<i64: 32, 32>}, {pipeline_mode = #tpu.pipeline_mode<synchronous>, transform_indices = @transform_3, window_bounds = array<i64: 1, 32>}, {pipeline_mode = #tpu.pipeline_mode<synchronous>, transform_indices = @transform_4, window_bounds = array<i64: 1, 1, 32>}, {pipeline_mode = #tpu.pipeline_mode<synchronous>, transform_indices = @transform_5, window_bounds = array<i64: 1, 1>}, {transform_indices = @transform_6, window_bounds = array<i64: 8, 1, 32>}, {transform_indices = @transform_7, window_bounds = array<i64: 8, 16>}]} {
    %c0 = arith.constant 0 : index
    %c0_0 = arith.constant 0 : index
    %c0_1 = arith.constant 0 : index
    %0 = vector.load %arg1[%c0, %c0_0, %c0_1] : memref<8x16x32xf32, #tpu.memory_space<vmem>>, vector<8x16x32xf32>
    %1 = vector.shape_cast %0 : vector<8x16x32xf32> to vector<128x32xf32>
    %c0_2 = arith.constant 0 : index
    %c0_3 = arith.constant 0 : index
    %2 = vector.load %arg3[%c0_2, %c0_3] : memref<32x32xf32, #tpu.memory_space<vmem>>, vector<32x32xf32>
    %cst = arith.constant dense<0.000000e+00> : vector<128x32xf32>
    %3 = tpu.matmul %1, %2, %cst {dimension_numbers = #tpu.dot_dimension_numbers<[1], [0], [0], [1], [0, 0, 1, 1], [], []>} : vector<128x32xf32>, vector<32x32xf32>, vector<128x32xf32> -> vector<128x32xf32>
    %c0_4 = arith.constant 0 : index
    %c0_5 = arith.constant 0 : index
    %4 = vector.load %arg4[%c0_4, %c0_5] : memref<1x32xf32, #tpu.memory_space<vmem>>, vector<1x32xf32>
    %5 = vector.broadcast %4 : vector<1x32xf32> to vector<128x32xf32>
    %6 = arith.addf %3, %5 : vector<128x32xf32>
    %7 = vector.shape_cast %6 : vector<128x32xf32> to vector<8x16x32xf32>
    %c0_6 = arith.constant 0 : index
    %c0_7 = arith.constant 0 : index
    %c0_8 = arith.constant 0 : index
    %8 = vector.load %arg2[%c0_6, %c0_7, %c0_8] : memref<8x1x32xf32, #tpu.memory_space<vmem>>, vector<8x1x32xf32>
    %9 = vector.broadcast %8 : vector<8x1x32xf32> to vector<8x16x32xf32>
    %10 = arith.addf %7, %9 : vector<8x16x32xf32>
    %cst_9 = arith.constant 0.000000e+00 : f32
    %11 = vector.broadcast %cst_9 : f32 to vector<8x16x32xf32>
    %12 = arith.maximumf %10, %11 : vector<8x16x32xf32>
    %c0_10 = arith.constant 0 : index
    %c0_11 = arith.constant 0 : index
    %c0_12 = arith.constant 0 : index
    %13 = vector.load %arg5[%c0_10, %c0_11, %c0_12] : memref<1x1x32xf32, #tpu.memory_space<vmem>>, vector<1x1x32xf32>
    %14 = vector.broadcast %13 : vector<1x1x32xf32> to vector<8x16x32xf32>
    %15 = arith.mulf %12, %14 : vector<8x16x32xf32>
    %cst_13 = arith.constant dense<0.000000e+00> : vector<8x16xf32>
    %16 = vector.multi_reduction <add>, %15, %cst_13 [2] : vector<8x16x32xf32> to vector<8x16xf32>
    %c0_14 = arith.constant 0 : index
    %c0_15 = arith.constant 0 : index
    %17 = vector.load %arg6[%c0_14, %c0_15] : memref<1x1xf32, #tpu.memory_space<vmem>>, vector<1x1xf32>
    %18 = vector.broadcast %17 : vector<1x1xf32> to vector<8x16xf32>
    %19 = arith.addf %16, %18 : vector<8x16xf32>
    %cst_16 = arith.constant dense<0xFF800000> : vector<8xf32>
    %20 = vector.multi_reduction <maximumf>, %19, %cst_16 [1] : vector<8x16xf32> to vector<8xf32>
    %21 = vector.shape_cast %20 : vector<8xf32> to vector<8x1xf32>
    %22 = vector.broadcast %21 : vector<8x1xf32> to vector<8x16xf32>
    %23 = arith.subf %19, %22 : vector<8x16xf32>
    %24 = math.exp %23 : vector<8x16xf32>
    %cst_17 = arith.constant dense<0.000000e+00> : vector<8xf32>
    %25 = vector.multi_reduction <add>, %24, %cst_17 [1] : vector<8x16xf32> to vector<8xf32>
    %26 = vector.shape_cast %25 : vector<8xf32> to vector<8x1xf32>
    %27 = vector.broadcast %26 : vector<8x1xf32> to vector<8x16xf32>
    %28 = arith.divf %24, %27 : vector<8x16xf32>
    %29 = vector.shape_cast %28 : vector<8x16xf32> to vector<8x1x16xf32>
    "tpu.trace_start"() <{level = 10 : i32, message = "bqp,bpe->bqe"}> : () -> ()
    %cst_18 = arith.constant dense<0.000000e+00> : vector<8x1x32xf32>
    %30 = tpu.matmul %29, %0, %cst_18 {dimension_numbers = #tpu.dot_dimension_numbers<[2], [1], [1], [2], [0, 0, 0, 1, 1, 2], [0], [0]>} : vector<8x1x16xf32>, vector<8x16x32xf32>, vector<8x1x32xf32> -> vector<8x1x32xf32>
    "tpu.trace_stop"() : () -> ()
    %c0_19 = arith.constant 0 : index
    %c0_20 = arith.constant 0 : index
    %c0_21 = arith.constant 0 : index
    %31 = vector.load %arg7[%c0_19, %c0_20, %c0_21] : memref<8x1x32xf32, #tpu.memory_space<vmem>>, vector<8x1x32xf32>
    tpu.vector_store %arg7[%c0_19, %c0_20, %c0_21], %30 {strides = array<i32>} : memref<8x1x32xf32, #tpu.memory_space<vmem>>, vector<8x1x32xf32>,
    %c0_22 = arith.constant 0 : index
    %c0_23 = arith.constant 0 : index
    %32 = vector.load %arg8[%c0_22, %c0_23] : memref<8x16xf32, #tpu.memory_space<vmem>>, vector<8x16xf32>
    tpu.vector_store %arg8[%c0_22, %c0_23], %28 {strides = array<i32>} : memref<8x16xf32, #tpu.memory_space<vmem>>, vector<8x16xf32>,
    return
  }
  func.func @transform_0(%arg0: i32) -> (i32, i32, i32) {
    %c0_i32 = arith.constant 0 : i32
    %c0_i32_0 = arith.constant 0 : i32
    %c0_i32_1 = arith.constant 0 : i32
    return %arg0, %c0_i32, %c0_i32_0 : i32, i32, i32
  }
  func.func @transform_1(%arg0: i32) -> (i32, i32, i32) {
    %c0_i32 = arith.constant 0 : i32
    %c0_i32_0 = arith.constant 0 : i32
    %c0_i32_1 = arith.constant 0 : i32
    return %arg0, %c0_i32, %c0_i32_0 : i32, i32, i32
  }
  func.func @transform_2(%arg0: i32) -> (i32, i32) {
    %c0_i32 = arith.constant 0 : i32
    %c0_i32_0 = arith.constant 0 : i32
    %c0_i32_1 = arith.constant 0 : i32
    return %c0_i32, %c0_i32_0 : i32, i32
  }
  func.func @transform_3(%arg0: i32) -> (i32, i32) {
    %c0_i32 = arith.constant 0 : i32
    %c0_i32_0 = arith.constant 0 : i32
    %c0_i32_1 = arith.constant 0 : i32
    return %c0_i32, %c0_i32_0 : i32, i32
  }
  func.func @transform_4(%arg0: i32) -> (i32, i32, i32) {
    %c0_i32 = arith.constant 0 : i32
    %c0_i32_0 = arith.constant 0 : i32
    %c0_i32_1 = arith.constant 0 : i32
    %c0_i32_2 = arith.constant 0 : i32
    return %c0_i32, %c0_i32_0, %c0_i32_1 : i32, i32, i32
  }
  func.func @transform_5(%arg0: i32) -> (i32, i32) {
    %c0_i32 = arith.constant 0 : i32
    %c0_i32_0 = arith.constant 0 : i32
    %c0_i32_1 = arith.constant 0 : i32
    return %c0_i32, %c0_i32_0 : i32, i32
  }
  func.func @transform_6(%arg0: i32) -> (i32, i32, i32) {
    %c0_i32 = arith.constant 0 : i32
    %c0_i32_0 = arith.constant 0 : i32
    %c0_i32_1 = arith.constant 0 : i32
    return %arg0, %c0_i32, %c0_i32_0 : i32, i32, i32
  }
  func.func @transform_7(%arg0: i32) -> (i32, i32) {
    %c0_i32 = arith.constant 0 : i32
    %c0_i32_0 = arith.constant 0 : i32
    return %arg0, %c0_i32 : i32, i32
  }
}

</mosaic_0001>

<bundles_post_ra>
// kernel: tpu_custom_call.1
= control target key start
LH: loop header
LB: loop body
LE: loop exit
PB: predicated region body
PF: predicated region fallthrough
CT: control target
= control target key end

     0   :  { %s3478_s0 = inlined_call_operand.hbm [shape: f32[16,16,32], index: 0, kind: input, shape index: {}]   ;;  %s3479_s1 = inlined_call_operand.hbm [shape: f32[16,1,32], index: 1, kind: input, shape index: {}]   ;;  %s3480_s2 = inlined_call_operand.hbm [shape: f32[32,32], index: 2, kind: input, shape index: {}]   ;;  %s3481_s3 = inlined_call_operand.vmem [shape: f32[1,32], index: 3, kind: input, shape index: {}]   ;;  %s3482_s4 = inlined_call_operand.vmem [shape: f32[1,1,32], index: 4, kind: input, shape index: {}]   ;;  %s3483_s5 = inlined_call_operand.<no memory space> [shape: f32[1,1], index: 5, kind: input, shape index: {}]   ;;  %s3484_s6 = inlined_call_operand.hbm [shape: f32[16,1,32], index: 6, kind: output, shape index: {0}]   ;;  %s3485_s7 = inlined_call_operand.hbm [shape: f32[16,16], index: 7, kind: output, shape index: {1}]  }
   0x1   :  { %3494 = sst [smem:[#allocation19_spill]] %s3478_s0  ;;  %v13_v0 = vstv %s3483_s5 }
   0x2   :  { %3495 = sst [smem:[#allocation20_spill]] %s3480_s2  ;;  %14 = vst [vmem:[#allocation2] sm:$0x1] %v13_v0 }
   0x3   :  { %15 = vsyncpa [#allocation4], 0 }
   0x4   :  { %17 = vsyncpa [#allocation4 + $0x1], 0 }
   0x5   :  { %18 = vsyncpa [#allocation7], 0 }
   0x6   :  { %20 = vsyncpa [#allocation7 + $0x1], 0 }
   0x7   :  { %21 = vsyncpa [#allocation5], 0 }
   0x8   :  { %23 = vsyncpa [#allocation5 + $0x1], 0 }
   0x9   :  { %24 = vsyncpa [#allocation11], 0 }
   0xa   :  { %26 = vsyncpa [#allocation11 + $0x1], 0  ;;  %s2693_s26 = smov 0   ;;  %s2695_s27 = smov 0  }
   0xb   :  { %s2697_s28 = smov 0   ;;  %s2699_s29 = smov 0  }
   0xc LB: > { %3496 = sst [smem:[#allocation17_spill]] %s2629_s28  ;;  %s2714_s5 = sadd.s32 4294967295, %s2633_s29   ;;  %s2633_s29 = sphi %s2699_s29, %s3529_s29   ;;  %s2629_s28 = sphi %s2697_s28, %s3526_s28   ;;  %s2625_s27 = sphi %s2695_s27, %s3528_s27   ;;  %s2621_s26 = sphi %s2693_s26, %s3527_s26  }
   0xd   : > { %s2085_s30 = sadd.s32 4294967294, %s2633_s29   ;;  %p52_p0 = scmp.ne.s32.totalorder %s2625_s27, %s2621_s26 }
   0xe   : > { %p3486_p1 = scmp.eq.s32.totalorder %s2714_s5, 0  ;;  %p192_p3 = scmp.eq.s32.totalorder %s2085_s30, 1 }
   0xf   : > { %p2086_p5 = scmp.ge.s32.totalorder %s2633_s29, 1  ;;  %p225_p7 = scmp.lt.s32.totalorder %s2633_s29, 3 }
  0x10   : > { %p2723_p4 = por %p3486_p1, %p52_p0  ;;  %p2728_p6 = por %p192_p3, %p52_p0 }
  0x11   : > { %p2733_p8 = pnand %p2086_p5, %p225_p7  ;;  %s2635_s11 = smov [#allocation8]  }
  0x12   : > { %s3497_s8 = scalar_select %p2723_p4, 1, 0 }
  0x13   : > { %s3498_s9 = scalar_select %p2728_p6, 1, 0 }
  0x14   : > { %s3499_s10 = scalar_select %p2733_p8, 1, 0 }
  0x15   : > { %s237_s12 = sshll.u32 %s2635_s11, 4  ;;  %p2324_p9 = pneg %p2733_p8  ;;  %s2737_s12 = int_to_ptr.vmem [resolvable:$true] %s237_s12 }
  0x16   : > { %s2749_s14 = sadd.s32 1, %s2633_s29   ;;  %s39_s15 = sadd.s32 1, %s2629_s28 }
  0x17   : > { %p2744_p11 = pnand %p2324_p9, %p3486_p1  ;;  %s36_s16 = ssub.s32 %s2633_s29, %s2749_s14 }
  0x18   : > { %s3501_s2 = sld [smem:[#allocation20_spill]] }
  0x19   : > { %p2441_p13 = pneg %p2744_p11 }
  0x1e   : > { %s2439_s19 = scalar_lea.hbm %s3501_s2, 512 }
  0x1f   : > { %p2440_p12 = scmp.ne.s32.totalorder %s3501_s2, %s2439_s19  ;;  %p2446_p5 = scmp.lt.u32.totalorder %s2439_s19, %s3501_s2 }
  0x21   : > { %p2442_p0 = pnand %p2441_p13, %p2440_p12 }
  0x23   : > { %p2443_p3 = pneg %p2442_p0 }
  0x25   : > { %p2448_p7 = pnand %p2446_p5, %p2443_p3 }
  0x27   : > { %2451 = shalt.err (!%p2448_p7)
}
  0x28   : > { %s2452_s24 = scalar_lea.vmem %s2737_s12, 512  ;;  %p2460_p2 = scmp.lt.s32.totalorder %s2737_s12, %s2737_s12 }
  0x29   : > { %p2453_p9 = scmp.ne.s32.totalorder %s2737_s12, %s2452_s24  ;;  %p2461_p6 = scmp.lt.s32.totalorder %s2452_s24, %s2452_s24 }
  0x2b   : > { %p2455_p10 = pnand %p2453_p9, %p2441_p13  ;;  %p2462_p4 = por %p2461_p6, %p2460_p2 }
  0x2d   : > { %p2456_p1 = pneg %p2455_p10 }
  0x2f   : > { %p2463_p8 = pnand %p2462_p4, %p2456_p1 }
  0x31   : > { %2466 = shalt.err (!%p2463_p8)
}
  0x32   : > { %s3489_s25 = smov 128   ;;  %s2637_s30 = smov 8  }
  0x33   : > { %2327 = dma.hbm_to_vmem [thread:$0]  (!%p2744_p11), %s3501_s2, 512, %s2737_s12, [#allocation7], %s3489_s25, %s3489_s25, %s2637_s30  }
  0x34   : > { %p37_p1 = scmp.eq.s32.totalorder %s36_s16, 0  ;;  %p46_p2 = scmp.ne.s32.totalorder %s2629_s28, %s2625_s27 }
  0x35   : > { %p47_p4 = scmp.eq.s32.totalorder %s2633_s29, 0  ;;  %p2343_p6 = scmp.lt.s32.totalorder %s2633_s29, 2 }
  0x36   : > { %s2783_s18 = scalar_select %p37_p1, %s2629_s28, %s39_s15  }
  0x37   : > { %p48_p8 = por %p47_p4, %p46_p2  ;;  %p3503_p10 = scmp.eq.s32.totalorder %s2714_s5, 1 }
  0x38   : > { %3502 = sst [smem:[#allocation18_spill]] %s2783_s18  ;;  %s2792_s13 = sand.u32 1, %s2629_s28  }
  0x39   : > { %p2787_p12 = por %p3503_p10, %p46_p2  ;;  %s2145_s20 = sshll.u32 %s2633_s29, 11 }
  0x3a   : > { %s2089_s21 = sshll.u32 %s2792_s13, 7  ;;  %s3505_s0 = sld [smem:[#allocation19_spill]] }
  0x3b   : > { %s264_s15 = scalar_lea.vmem [#allocation3], %s2089_s21  ;;  %p2801_p11 = pnand %p2343_p6, %p48_p8 }
  0x3c   : > { %s272_s23 = sshll.u32 %s264_s15, 4  ;;  %s261_s17 = scalar_lea.sflag [#allocation4], %s2792_s13  ;;  %s2805_s23 = int_to_ptr.vmem [resolvable:$true] %s272_s23 }
  0x3d   : > { %p2469_p0 = pneg %p2801_p11 }
  0x40   : > { %s2799_s16 = scalar_lea.hbm %s3505_s0, %s2145_s20  ;;  %s2472_s12 = scalar_lea.hbm %s3505_s0, 4096 }
  0x41   : > { %s2467_s25 = scalar_lea.hbm %s2799_s16, 2048  ;;  %p2473_p7 = scmp.lt.u32.totalorder %s2799_s16, %s3505_s0 }
  0x42   : > { %p2468_p13 = scmp.ne.s32.totalorder %s2799_s16, %s2467_s25  ;;  %p2474_p9 = scmp.lt.u32.totalorder %s2472_s12, %s2467_s25 }
  0x43   : > { %p2476_p2 = scmp.lt.u32.totalorder %s2467_s25, %s2799_s16 }
  0x44   : > { %p2470_p3 = pnand %p2469_p0, %p2468_p13  ;;  %p2475_p1 = por %p2474_p9, %p2473_p7 }
  0x46   : > { %p2471_p5 = pneg %p2470_p3  ;;  %p2477_p4 = por %p2476_p2, %p2475_p1 }
  0x48   : > { %p2478_p6 = pnand %p2477_p4, %p2471_p5 }
  0x4a   : > { %2481 = shalt.err (!%p2478_p6)
}
  0x4b   : > { %s2482_s11 = scalar_lea.vmem %s2805_s23, 2048  ;;  %s2638_s20 = smov [#allocation3]  }
  0x4c   : > { %p2483_p8 = scmp.ne.s32.totalorder %s2805_s23, %s2482_s11  ;;  %s2487_s21 = sshll.u32 %s2638_s20, 4  ;;  %s2488_s21 = int_to_ptr.vmem [resolvable:$false] %s2487_s21 }
  0x4d   : > { %s2489_s22 = scalar_lea.vmem %s2488_s21, 4096  ;;  %p2490_p3 = scmp.lt.s32.totalorder %s2805_s23, %s2488_s21 }
  0x4e   : > { %p2485_p10 = pnand %p2483_p8, %p2469_p0  ;;  %p2491_p7 = scmp.lt.s32.totalorder %s2489_s22, %s2482_s11 }
  0x50   : > { %p2486_p13 = pneg %p2485_p10  ;;  %p2492_p9 = por %p2491_p7, %p2490_p3 }
  0x52   : > { %p2493_p1 = pnand %p2492_p9, %p2486_p13 }
  0x54   : > { %2496 = shalt.err (!%p2493_p1)
}
  0x55   : > { %s3507_s25 = smov 128   ;;  %s2093_s12 = sshll.u32 %s2792_s13, 3 }
  0x56   : > { %2331 = dma.hbm_to_vmem [thread:$0]  (!%p2801_p11), %s2799_s16, 2048, %s2805_s23, %s261_s17, %s3507_s25, %s3507_s25, %s2637_s30  }
  0x57   : > { %s2146_s15 = sshll.u32 %s2633_s29, 7  ;;  %s286_s22 = scalar_lea.vmem [#allocation6], %s2093_s12 }
  0x58   : > { %s2844_s21 = scalar_lea.hbm %s3479_s1, %s2146_s15  ;;  %s293_s0 = sshll.u32 %s286_s22, 4  ;;  %s2846_s0 = int_to_ptr.vmem [resolvable:$true] %s293_s0 }
  0x59   : > { %s3508_s2 = sand.u32 1, %s2633_s29   ;;  %s2497_s28 = scalar_lea.hbm %s2844_s21, 128 }
  0x5a   : > { %s2850_s18 = scalar_lea.sflag [#allocation7], %s3508_s2  ;;  %p2498_p5 = scmp.ne.s32.totalorder %s2844_s21, %s2497_s28 }
  0x5b   : > { %s2502_s16 = scalar_lea.hbm %s3479_s1, 256  ;;  %p2503_p6 = scmp.lt.u32.totalorder %s2844_s21, %s3479_s1 }
  0x5c   : > { %p2500_p2 = pnand %p2498_p5, %p2469_p0  ;;  %p2504_p8 = scmp.lt.u32.totalorder %s2502_s16, %s2497_s28 }
  0x5d   : > { %p2506_p13 = scmp.lt.u32.totalorder %s2497_s28, %s2844_s21 }
  0x5e   : > { %p2501_p4 = pneg %p2500_p2  ;;  %p2505_p10 = por %p2504_p8, %p2503_p6 }
  0x60   : > { %p2507_p3 = por %p2506_p13, %p2505_p10 }
  0x62   : > { %p2508_p7 = pnand %p2507_p3, %p2501_p4 }
  0x64   : > { %2511 = shalt.err (!%p2508_p7)
}
  0x65   : > { %s2512_s2 = scalar_lea.vmem %s2846_s0, 128  ;;  %s2639_s25 = smov [#allocation6]  }
  0x66   : > { %p2513_p9 = scmp.ne.s32.totalorder %s2846_s0, %s2512_s2  ;;  %s2517_s12 = sshll.u32 %s2639_s25, 4  ;;  %s2518_s12 = int_to_ptr.vmem [resolvable:$false] %s2517_s12 }
  0x67   : > { %s2519_s15 = scalar_lea.vmem %s2518_s12, 256  ;;  %p2520_p2 = scmp.lt.s32.totalorder %s2846_s0, %s2518_s12 }
  0x68   : > { %p2515_p1 = pnand %p2513_p9, %p2469_p0  ;;  %p2521_p6 = scmp.lt.s32.totalorder %s2519_s15, %s2512_s2 }
  0x6a   : > { %p2516_p5 = pneg %p2515_p1  ;;  %p2522_p8 = por %p2521_p6, %p2520_p2 }
  0x6c   : > { %p2523_p10 = pnand %p2522_p8, %p2516_p5 }
  0x6e   : > { %2526 = shalt.err (!%p2523_p10)
}
  0x6f   : > { %s2640_s28 = smov 16   ;;  %s2641_s11 = smov 1  }
  0x70   : > { %2334 = dma.hbm_to_vmem [thread:$0]  (!%p2801_p11), %s2844_s21, 128, %s2846_s0, %s2850_s18, %s2640_s28, %s2640_s28, %s2641_s11  }
  0x71   : > { %p3509_p0 = scmp.ne.s32.totalorder %s3499_s10, 0 }
  0x72   : > { %s2879_s20 = sand.u32 (!%p3509_p0), 1, %s2625_s27   ;;  %p3510_p4 = scmp.ne.s32.totalorder (!%p3509_p0), %s3497_s8, 0 }
  0x73   : > { %305 = sbr.rel (%p3509_p0) target bundleno = 1456 (0x5b0), region = 44  ;;  %s2097_s22 = sshll.u32 (!%p3509_p0), %s2879_s20, 7 }
  0x74   : > { %s308_s30 = scalar_lea.sflag (!%p3509_p0), [#allocation4], %s2879_s20  ;;  %s2883_s13 = scalar_lea.vmem (!%p3509_p0), [#allocation3], %s2097_s22 }
  0x7a   : > { %2600 = dma.done.wait (%p3510_p4), %s308_s30, 2048  }
  0x7b   : > { %2602 = vsyncadd (%p3510_p4), %s308_s30, 4294965248  ;;  %s316_s0 = sand.u32 1, %s2714_s5   ;;  %s2891_s10 = sshll.u32 %s2879_s20, 3 }
  0x7c   : > { %s317_s18 = scalar_lea.sflag [#allocation7], %s316_s0  ;;  %s2894_s24 = scalar_lea.vmem [#allocation6], %s2891_s10 }
  0x7d   : > { %2604 = dma.done.wait (%p3510_p4), %s317_s18, 128  }
  0x7e   : > { %2606 = vsyncadd (%p3510_p4), %s317_s18, 4294967168  ;;  %p3511_p11 = scmp.eq.s32.totalorder %s2714_s5, 0 }
  0x80   : > { %2608 = dma.done.wait (%p3511_p11), [#allocation7], 512   ;;  %p3512_p13 = pmov %p3511_p11 }
  0x81   : > { %vm395_vm0 = vcmask 261120   ;;  %v384_v1 = vld [vmem:[#allocation8] sm:$0xff]  ;;  %v385_v2 = vld [vmem:[#allocation8 + $0x8] sm:$0xff]  ;;  %v386_v3 = vld [vmem:[#allocation8 + $0x10] sm:$0xff]  ;;  %v2642_v30 = vmov 0   ;;  %vm801_vm1 = vcmask 130112  }
  0x82   : > { %2610 = vsyncadd (%p3512_p13), [#allocation7], 4294966784  ;;  %v2280_v4 = vpack.c.bf16 %v385_v2, %v384_v1  ;;  %v387_v5 = vld [vmem:[#allocation8 + $0x18] sm:$0xff]  ;;  %v2905_v6 = vld [vmem:[%s2883_s13] sm:$0xff]  ;;  %2389 = vset.pattern.permute.xlu0 %v2642_v30  ;;  %2390 = vset.pattern.permute.xlu1 %v2642_v30  ;;  %vm866_vm2 = vcmask 1041409   ;;  %vm868_vm3 = vcmask 1042434  }
  0x83   : > { %v2284_v7 = vpack.c.bf16 %v387_v5, %v386_v3  ;;  %2200 = vmatprep.mubr.msk.f32.mxu0 %vm395_vm0, %v2905_v6  ;;  %v2910_v8 = vld [vmem:[%s2883_s13 + $0x10] sm:$0xff]  ;;  %v2913_v9 = vld [vmem:[%s2883_s13 + $0x18] sm:$0xff]  ;;  %v2916_v10 = vld [vmem:[%s2883_s13 + $0x20] sm:$0xff]  ;;  %vm870_vm4 = vcmask 1043459   ;;  %vm872_vm5 = vcmask 1044484   ;;  %vm874_vm6 = vcmask 1045509  }
  0x84   : > { %2281 = vmatprep.subr.bf16.mxu0 %v2280_v4  ;;  %v2921_v12 = vld [vmem:[%s2883_s13 + $0x28] sm:$0xff]  ;;  %v2924_v13 = vld [vmem:[%s2883_s13 + $0x30] sm:$0xff]  ;;  %v2927_v14 = vld [vmem:[%s2883_s13 + $0x38] sm:$0xff]  ;;  %vm876_vm7 = vcmask 1046534   ;;  %vm878_vm8 = vcmask 1047559   ;;  %vm881_vm9 = vcmask 130048  }
  0x85   : > { %2283 = vmatpush3.bf16.msra.mxu0 %v2280_v4  ;;  %v2934_v17 = vld [vmem:[%s2883_s13 + $0x40] sm:$0xff]  ;;  %v2937_v18 = vld [vmem:[%s2883_s13 + $0x48] sm:$0xff]  ;;  %v2940_v19 = vld [vmem:[%s2883_s13 + $0x50] sm:$0xff]  ;;  %vm2644_vm10 = vmmov 0   ;;  %s364_s17 = scalar_lea.vmem [#allocation10], %s2891_s10  ;;  %s2147_s2 = sshll.u32 %s2714_s5, 7 }
  0x86   : > { %2285 = vmatprep.subr.bf16.mxu0 %v2284_v7  ;;  %v2945_v21 = vld [vmem:[%s2883_s13 + $0x58] sm:$0xff]  ;;  %v2948_v22 = vld [vmem:[%s2883_s13 + $0x60] sm:$0xff]  ;;  %v2951_v23 = vld [vmem:[%s2883_s13 + $0x68] sm:$0xff]  ;;  %s3398_s15 = scalar_lea.hbm %s3485_s7, %s2147_s2  ;;  %s1951_s28 = sshll.u32 %s364_s17, 4  ;;  %s1952_s28 = int_to_ptr.vmem [resolvable:$true] %s1951_s28 }
  0x87   : > { %v2958_v26 = vld [vmem:[%s2883_s13 + $0x70] sm:$0xff]  ;;  %v2961_v27 = vld [vmem:[%s2883_s13 + $0x78] sm:$0xff]  ;;  %v2966_v29 = vld [vmem:[%s2883_s13 + $0x8] sm:$0xff]  ;;  %s1922_s11 = scalar_lea.sflag [#allocation11], %s2879_s20  ;;  %s2527_s22 = scalar_lea.vmem %s1952_s28, 128 }
  0x88   : > { %v3001_v31 = vld [vmem:[%s3481_s3] ss:$0 sm:$0xff]  ;;  %v2119_v33 = vld [vmem:[%s2894_s24] ss:$0 sm:$0xff]  ;;  %v2120_v40 = vld [vmem:[%s2894_s24 + $0x1] ss:$0 sm:$0xff]  ;;  %p2528_p3 = scmp.ne.s32.totalorder %s1952_s28, %s2527_s22 }
  0x89   : > { %2287 = vmatpush3.bf16.msra.mxu0 %v2284_v7  ;;  %v3010_v41 = vld [vmem:[%s3482_s4] ss:$0 sm:$0xff]  ;;  %v2121_v51 = vld [vmem:[%s2894_s24 + $0x2] ss:$0 sm:$0xff]  ;;  %v2122_v63 = vld [vmem:[%s2894_s24 + $0x3] ss:$0 sm:$0xff] }
  0x8a   : > { %p2529_p7 = pnand %p2528_p3, %p2787_p12  ;;  %s2646_s30 = smov [#allocation10]  }
  0x8b   : > { %s2531_s13 = sshll.u32 %s2646_s30, 4  ;;  %s2532_s13 = int_to_ptr.vmem [resolvable:$false] %s2531_s13 }
  0x8c   : > { %2201 = vmatmul.mubr.msk.f32.vlgmr.msra.gmra.mrb[0].mxu0 %vm395_vm0, %v2966_v29  ;;  %p2530_p9 = pneg %p2529_p7  ;;  %s2533_s0 = scalar_lea.vmem %s2532_s13, 256 }
  0x8d   : > { %2203 = vmatprep.mubr.msk.f32.mxu0 %vm395_vm0, %v2910_v8  ;;  %p2534_p1 = scmp.lt.s32.totalorder %s1952_s28, %s2532_s13  ;;  %p2535_p5 = scmp.lt.s32.totalorder %s2533_s0, %s2527_s22 }
  0x8f   : > { %p2536_p2 = por %p2535_p5, %p2534_p1 }
  0x90   : > { %2204 = vmatmul.mubr.msk.f32.gmra.mrb[2].mxu0 %vm395_vm0, %v2913_v9 }
  0x91   : > { %2206 = vmatprep.mubr.msk.f32.mxu0 %vm395_vm0, %v2916_v10  ;;  %p2537_p6 = pnand %p2536_p2, %p2530_p9 }
  0x94   : > { %2207 = vmatmul.mubr.msk.f32.gmra.mrb[4].mxu0 %vm395_vm0, %v2921_v12 }
  0x95   : > { %2209 = vmatprep.mubr.msk.f32.mxu0 %vm395_vm0, %v2924_v13 }
  0x98   : > { %2210 = vmatmul.mubr.msk.f32.gmra.mrb[6].mxu0 %vm395_vm0, %v2927_v14 }
  0x99   : > { %2212 = vmatprep.mubr.msk.f32.mxu0 %vm395_vm0, %v2934_v17 }
  0x9c   : > { %2213 = vmatmul.mubr.msk.f32.gmra.mrb[8].mxu0 %vm395_vm0, %v2937_v18 }
  0x9d   : > { %2215 = vmatprep.mubr.msk.f32.mxu0 %vm395_vm0, %v2940_v19 }
  0xa0   : > { %2216 = vmatmul.mubr.msk.f32.gmra.mrb[10].mxu0 %vm395_vm0, %v2945_v21 }
  0xa1   : > { %2218 = vmatprep.mubr.msk.f32.mxu0 %vm395_vm0, %v2948_v22 }
  0xa4   : > { %2219 = vmatmul.mubr.msk.f32.gmra.mrb[12].mxu0 %vm395_vm0, %v2951_v23 }
  0xa5   : > { %2221 = vmatprep.mubr.msk.f32.mxu0 %vm395_vm0, %v2958_v26 }
  0xa8   : > { %2222 = vmatmul.mubr.msk.f32.gmra.mrb[14].mxu0 %vm395_vm0, %v2961_v27 }
 0x15f   : > { %v2202_v32 = vpop.f32.mrb[0].mxu0 }
 0x160   : > { %v516_v34 = vadd.f32 %v2202_v32, %v3001_v31  ;;  %v510_v35 = vpop.f32.mrb[1].mxu0 }
 0x161   : > { %v511_v36 = vadd.f32 %v3001_v31, %v510_v35  ;;  %v2123_v35 = vld [vmem:[%s2894_s24 + $0x4] ss:$0 sm:$0xff] }
 0x162   : > { %v646_v37 = vadd.f32 %v2119_v33, %v516_v34 }
 0x163   : > { %v645_v38 = vadd.f32 %v2119_v33, %v511_v36  ;;  %v2205_v39 = vpop.f32.mrb[2].mxu0 }
 0x164   : > { %v662_v42 = vmax.f32 %v646_v37, 0.0  ;;  %v526_v43 = vadd.f32 %v2205_v39, %v3001_v31  ;;  %v520_v44 = vpop.f32.mrb[3].mxu0 }
 0x165   : > { %v661_v45 = vmax.f32 %v645_v38, 0.0  ;;  %v521_v46 = vadd.f32 %v3001_v31, %v520_v44 }
 0x166   : > { %v648_v47 = vadd.f32 %v2120_v40, %v526_v43  ;;  %v685_v48 = vmul.f32 %v3010_v41, %v662_v42 }
 0x167   : > { %v647_v49 = vadd.f32 %v2120_v40, %v521_v46  ;;  %v2208_v50 = vpop.f32.mrb[4].mxu0  ;;  %v684_v52 = vmul.f32 %v3010_v41, %v661_v45 }
 0x168   : > { %v664_v53 = vmax.f32 %v648_v47, 0.0  ;;  %v536_v54 = vadd.f32 %v2208_v50, %v3001_v31  ;;  %v530_v55 = vpop.f32.mrb[5].mxu0  ;;  %v703_v56 = vsel %vm395_vm0, %v685_v48, 0.0 }
 0x169   : > { %v663_v57 = vmax.f32 %v647_v49, 0.0  ;;  %v531_v58 = vadd.f32 %v3001_v31, %v530_v55  ;;  %704 = vadd.xlane.f32.xlu0 %v703_v56  ;;  %v700_v0 = vsel %vm395_vm0, %v684_v52, 0.0  ;;  %v2124_v49 = vld [vmem:[%s2894_s24 + $0x5] ss:$0 sm:$0xff] }
 0x16a   : > { %v650_v59 = vadd.f32 %v2121_v51, %v536_v54  ;;  %v687_v60 = vmul.f32 %v3010_v41, %v664_v53 }
 0x16b   : > { %v649_v61 = vadd.f32 %v2121_v51, %v531_v58  ;;  %v2211_v62 = vpop.f32.mrb[6].mxu0  ;;  %v686_v5 = vmul.f32 %v3010_v41, %v663_v57 }
 0x16c   : > { %v666_v1 = vmax.f32 %v650_v59, 0.0  ;;  %v546_v2 = vadd.f32 %v2211_v62, %v3001_v31  ;;  %v540_v3 = vpop.f32.mrb[7].mxu0  ;;  %v709_v4 = vsel %vm395_vm0, %v687_v60, 0.0  ;;  %v2125_v62 = vld [vmem:[%s2894_s24 + $0x6] ss:$0 sm:$0xff] }
 0x16d   : > { %v665_v7 = vmax.f32 %v649_v61, 0.0  ;;  %v541_v30 = vadd.f32 %v3001_v31, %v540_v3  ;;  %710 = vadd.xlane.f32.xlu1 %v709_v4  ;;  %701 = vadd.xlane.f32.xlu0 %v700_v0  ;;  %v706_v40 = vsel %vm395_vm0, %v686_v5, 0.0 }
 0x16e   : > { %v652_v32 = vadd.f32 %v2122_v63, %v546_v2  ;;  %v689_v42 = vmul.f32 %v3010_v41, %v666_v1 }
 0x16f   : > { %v651_v33 = vadd.f32 %v2122_v63, %v541_v30  ;;  %v2214_v34 = vpop.f32.mrb[8].mxu0  ;;  %v688_v36 = vmul.f32 %v3010_v41, %v665_v7 }
 0x170   : > { %v668_v37 = vmax.f32 %v652_v32, 0.0  ;;  %v556_v38 = vadd.f32 %v2214_v34, %v3001_v31  ;;  %v550_v39 = vpop.f32.mrb[9].mxu0  ;;  %v715_v54 = vsel %vm395_vm0, %v689_v42, 0.0 }
 0x171   : > { %v667_v43 = vmax.f32 %v651_v33, 0.0  ;;  %v551_v44 = vadd.f32 %v3001_v31, %v550_v39  ;;  %707 = vadd.xlane.f32.xlu1 %v706_v40  ;;  %v712_v45 = vsel %vm395_vm0, %v688_v36, 0.0 }
 0x172   : > { %v654_v46 = vadd.f32 %v2123_v35, %v556_v38  ;;  %713 = vadd.xlane.f32.xlu0 %v712_v45  ;;  %v691_v55 = vmul.f32 %v3010_v41, %v668_v37 }
 0x173   : > { %v653_v47 = vadd.f32 %v2123_v35, %v551_v44  ;;  %v2217_v48 = vpop.f32.mrb[10].mxu0  ;;  %v690_v50 = vmul.f32 %v3010_v41, %v667_v43  ;;  %v2126_v35 = vld [vmem:[%s2894_s24 + $0x7] ss:$0 sm:$0xff] }
 0x174   : > { %v670_v51 = vmax.f32 %v654_v46, 0.0  ;;  %v566_v52 = vadd.f32 %v2217_v48, %v3001_v31  ;;  %v560_v53 = vpop.f32.mrb[11].mxu0  ;;  %v721_v3 = vsel %vm395_vm0, %v691_v55, 0.0 }
 0x175   : > { %v669_v56 = vmax.f32 %v653_v47, 0.0  ;;  %v561_v57 = vadd.f32 %v3001_v31, %v560_v53  ;;  %716 = vadd.xlane.f32.xlu1 %v715_v54  ;;  %v718_v58 = vsel %vm395_vm0, %v690_v50, 0.0 }
 0x176   : > { %v656_v59 = vadd.f32 %v2124_v49, %v566_v52  ;;  %719 = vadd.xlane.f32.xlu0 %v718_v58  ;;  %v693_v4 = vmul.f32 %v3010_v41, %v670_v51  ;;  %v2128_v58 = vld [vmem:[#allocation2] ss:$0 sm:$0xff] }
 0x177   : > { %v655_v60 = vadd.f32 %v2124_v49, %v561_v57  ;;  %v2220_v61 = vpop.f32.mrb[12].mxu0  ;;  %v692_v63 = vmul.f32 %v3010_v41, %v669_v56 }
 0x178   : > { %v672_v0 = vmax.f32 %v656_v59, 0.0  ;;  %v576_v1 = vadd.f32 %v2220_v61, %v3001_v31  ;;  %v570_v2 = vpop.f32.mrb[13].mxu0  ;;  %v727_v40 = vsel %vm395_vm0, %v693_v4, 0.0 }
 0x179   : > { %v671_v5 = vmax.f32 %v655_v60, 0.0  ;;  %v571_v7 = vadd.f32 %v3001_v31, %v570_v2  ;;  %722 = vadd.xlane.f32.xlu1 %v721_v3  ;;  %v724_v30 = vsel %vm395_vm0, %v692_v63, 0.0 }
 0x17a   : > { %v658_v32 = vadd.f32 %v2125_v62, %v576_v1  ;;  %725 = vadd.xlane.f32.xlu0 %v724_v30  ;;  %v695_v42 = vmul.f32 %v3010_v41, %v672_v0 }
 0x17b   : > { %v657_v33 = vadd.f32 %v2125_v62, %v571_v7  ;;  %v2223_v34 = vpop.f32.mrb[14].mxu0  ;;  %v694_v36 = vmul.f32 %v3010_v41, %v671_v5  ;;  %v790_v5 = vlaneseq }
 0x17c   : > { %v674_v37 = vmax.f32 %v658_v32, 0.0  ;;  %v586_v38 = vadd.f32 %v2223_v34, %v3001_v31  ;;  %v580_v39 = vpop.f32.mrb[15].mxu0  ;;  %v733_v50 = vsel %vm395_vm0, %v695_v42, 0.0 }
 0x17d   : > { %v673_v43 = vmax.f32 %v657_v33, 0.0  ;;  %v581_v44 = vadd.f32 %v3001_v31, %v580_v39  ;;  %728 = vadd.xlane.f32.xlu1 %v727_v40  ;;  %v730_v45 = vsel %vm395_vm0, %v694_v36, 0.0  ;;  %v791_v30 = vand.u32 127, %v790_v5 }
 0x17e   : > { %v660_v46 = vadd.f32 %v2126_v35, %v586_v38  ;;  %731 = vadd.xlane.f32.xlu0 %v730_v45  ;;  %v697_v51 = vmul.f32 %v3010_v41, %v674_v37  ;;  %v3064_v34 = vshrl.u32 %v790_v5, 7 }
 0x17f   : > { %v659_v47 = vadd.f32 %v2126_v35, %v581_v44  ;;  %v696_v48 = vmul.f32 %v3010_v41, %v673_v43  ;;  %v796_v35 = vadd.s32 4294967288, %v791_v30 }
 0x180   : > { %v676_v49 = vmax.f32 %v660_v46, 0.0  ;;  %v739_v54 = vsel %vm395_vm0, %v697_v51, 0.0  ;;  %v3067_v38 = vsub.s32 %v791_v30, %v3064_v34 }
 0x181   : > { %v675_v52 = vmax.f32 %v659_v47, 0.0  ;;  %734 = vadd.xlane.f32.xlu1 %v733_v50  ;;  %v736_v53 = vsel %vm395_vm0, %v696_v48, 0.0  ;;  %v3070_v39 = vsub.s32 %v796_v35, %v3064_v34 }
 0x182   : > { %737 = vadd.xlane.f32.xlu0 %v736_v53  ;;  %v699_v55 = vmul.f32 %v3010_v41, %v676_v49 }
 0x183   : > { %v698_v31 = vmul.f32 %v3010_v41, %v675_v52 }
 0x184   : > { %v745_v57 = vsel %vm395_vm0, %v699_v55, 0.0 }
 0x185   : > { %740 = vadd.xlane.f32.xlu1 %v739_v54  ;;  %v742_v56 = vsel %vm395_vm0, %v698_v31, 0.0 }
 0x186   : > { %743 = vadd.xlane.f32.xlu0 %v742_v56 }
 0x189   : > { %746 = vadd.xlane.f32.xlu1 %v745_v57 }
 0x19c   : > { %755 = vperm.xlu0 %2389, %v2128_v58  }
 0x1f6   : > { %v705_v59 = vpop.xlane.xlu0 %704 }
 0x1fa   : > { %v711_v60 = vpop.xlane.xlu1 %710  ;;  %v702_v61 = vpop.xlane.xlu0 %701 }
 0x1fe   : > { %v708_v62 = vpop.xlane.xlu1 %707 }
 0x1ff   : > { %v714_v63 = vpop.xlane.xlu0 %713 }
 0x202   : > { %v717_v0 = vpop.xlane.xlu1 %716 }
 0x203   : > { %v720_v1 = vpop.xlane.xlu0 %719 }
 0x206   : > { %v723_v3 = vpop.xlane.xlu1 %722 }
 0x207   : > { %v726_v2 = vpop.xlane.xlu0 %725 }
 0x20a   : > { %v729_v41 = vpop.xlane.xlu1 %728 }
 0x20b   : > { %v732_v4 = vpop.xlane.xlu0 %731 }
 0x20e   : > { %v735_v32 = vpop.xlane.xlu1 %734 }
 0x20f   : > { %v738_v7 = vpop.xlane.xlu0 %737 }
 0x212   : > { %v741_v36 = vpop.xlane.xlu1 %740 }
 0x213   : > { %v744_v33 = vpop.xlane.xlu0 %743 }
 0x216   : > { %v747_v54 = vpop.xlane.xlu1 %746 }
 0x21b   : > { %v756_v37 = vpop.permute.xlu0 %755 }
 0x21c   : > { %v3072_v40 = vadd.f32 %v756_v37, %v702_v61  ;;  %v3074_v42 = vadd.f32 %v756_v37, %v705_v59  ;;  %v3076_v43 = vadd.f32 %v756_v37, %v708_v62  ;;  %v3078_v44 = vadd.f32 %v756_v37, %v711_v60 }
 0x21d   : > { %v3080_v45 = vadd.f32 %v756_v37, %v714_v63  ;;  %v3082_v46 = vadd.f32 %v756_v37, %v717_v0  ;;  %v3084_v47 = vadd.f32 %v756_v37, %v720_v1  ;;  %v3086_v48 = vadd.f32 %v756_v37, %v723_v3 }
 0x21e   : > { %v3088_v49 = vadd.f32 %v756_v37, %v726_v2  ;;  %v3090_v50 = vadd.f32 %v756_v37, %v729_v41  ;;  %v3092_v51 = vadd.f32 %v756_v37, %v732_v4  ;;  %v3094_v52 = vadd.f32 %v756_v37, %v735_v32 }
 0x21f   : > { %v3096_v53 = vadd.f32 %v756_v37, %v738_v7  ;;  %v3098_v31 = vadd.f32 %v756_v37, %v741_v36  ;;  %v795_v55 = vrot.slane %v3072_v40, %v3067_v38  ;;  %v800_v56 = vrot.slane %v3074_v42, %v3070_v39 }
 0x220   : > { %v806_v57 = vrot.slane %v3076_v43, %v3067_v38  ;;  %v810_v58 = vrot.slane %v3078_v44, %v3070_v39  ;;  %v3108_v59 = vadd.f32 %v756_v37, %v744_v33  ;;  %v3110_v60 = vadd.f32 %v756_v37, %v747_v54 }
 0x221   : > { %v815_v61 = vrot.slane %v3080_v45, %v3067_v38  ;;  %v819_v62 = vrot.slane %v3082_v46, %v3070_v39  ;;  %v802_v63 = vsel %vm801_vm1, %v800_v56, %v795_v55  ;;  %v824_v1 = vrot.slane %v3084_v47, %v3067_v38 }
 0x222   : > { %v811_v0 = vsel %vm801_vm1, %v810_v58, %v806_v57  ;;  %v828_v2 = vrot.slane %v3086_v48, %v3070_v39  ;;  %v833_v4 = vrot.slane %v3088_v49, %v3067_v38  ;;  %v837_v41 = vrot.slane %v3090_v50, %v3070_v39 }
 0x223   : > { %v820_v3 = vsel %vm801_vm1, %v819_v62, %v815_v61  ;;  %v842_v5 = vrot.slane %v3092_v51, %v3067_v38  ;;  %v846_v7 = vrot.slane %v3094_v52, %v3070_v39  ;;  %v851_v30 = vrot.slane %v3096_v53, %v3067_v38 }
 0x224   : > { %v855_v32 = vrot.slane %v3098_v31, %v3070_v39  ;;  %v867_v33 = vsel %vm866_vm2, %v811_v0, %v802_v63  ;;  %v829_v35 = vsel %vm801_vm1, %v828_v2, %v824_v1  ;;  %v860_v36 = vrot.slane %v3108_v59, %v3067_v38 }
 0x225   : > { %v864_v37 = vrot.slane %v3110_v60, %v3070_v39  ;;  %v869_v54 = vsel %vm868_vm3, %v820_v3, %v867_v33  ;;  %v838_v55 = vsel %vm801_vm1, %v837_v41, %v833_v4  ;;  %v847_v57 = vsel %vm801_vm1, %v846_v7, %v842_v5 }
 0x226   : > { %v871_v56 = vsel %vm870_vm4, %v829_v35, %v869_v54  ;;  %v856_v61 = vsel %vm801_vm1, %v855_v32, %v851_v30  ;;  %v888_v3 = vsub.s32 0, %v3064_v34  ;;  %v3493_v4 = vsub.s32 3, %v3064_v34 }
 0x227   : > { %v873_v58 = vsel %vm872_vm5, %v838_v55, %v871_v56  ;;  %v865_v63 = vsel %vm801_vm1, %v864_v37, %v860_v36  ;;  %v892_v5 = vsub.s32 1, %v3064_v34  ;;  %v904_v32 = vsub.s32 4, %v3064_v34 }
 0x228   : > { %v875_v62 = vsel %vm874_vm6, %v847_v57, %v873_v58  ;;  %v3492_v54 = vsub.s32 5, %v3064_v34 }
 0x229   : > { %v877_v0 = vsel %vm876_vm7, %v856_v61, %v875_v62  ;;  %v3491_v61 = vsub.s32 6, %v3064_v34 }
 0x22a   : > { %v879_v1 = vsel %vm878_vm8, %v865_v63, %v877_v0 }
 0x22b   : > { %v882_v2 = vsel %vm881_vm9, %v879_v1, -inf }
 0x22c   : > { %883 = vmax.xlane.f32.xlu1 %v882_v2  ;;  %v916_v2 = vsub.s32 7, %v3064_v34 }
 0x2b9   : > { %v884_v41 = vpop.xlane.xlu1 %883 }
 0x2ba   : > { %v889_v7 = vrot.slane %v884_v41, %v888_v3  ;;  %v901_v33 = vrot.slane %v884_v41, %v3493_v4  ;;  %v893_v35 = vrot.slane %v884_v41, %v892_v5  ;;  %v905_v55 = vrot.slane %v884_v41, %v904_v32 }
 0x2bb   : > { %v909_v62 = vrot.slane %v884_v41, %v3492_v54 }
 0x2bc   : > { %v926_v30 = vsub.f32 %v3072_v40, %v889_v7  ;;  %v927_v36 = vsub.f32 %v3074_v42, %v889_v7  ;;  %v933_v56 = vsub.f32 %v3086_v48, %v901_v33  ;;  %v896_v40 = vsub.s32 2, %v3064_v34 }
 0x2bd   : > { %v928_v57 = vsub.f32 %v3076_v43, %v893_v35  ;;  %v935_v42 = vsub.f32 %v3090_v50, %v905_v55  ;;  %v929_v1 = vsub.f32 %v3078_v44, %v893_v35  ;;  %v913_v43 = vrot.slane %v884_v41, %v3491_v61 }
 0x2be   : > { %v942_v37 = vmul.f32 1.442695, %v926_v30  ;;  %v944_v58 = vmul.f32 1.442695, %v927_v36  ;;  %v956_v63 = vmul.f32 1.442695, %v933_v56  ;;  %v897_v0 = vrot.slane %v884_v41, %v896_v40 }
 0x2bf   : > { %v946_v48 = vmul.f32 1.442695, %v928_v57  ;;  %v937_v7 = vsub.f32 %v3094_v52, %v909_v62  ;;  %v960_v30 = vmul.f32 1.442695, %v935_v42  ;;  %v948_v50 = vmul.f32 1.442695, %v929_v1 }
 0x2c0   : > { %2391 = vpow2.f32 %v942_v37  ;;  %v930_v36 = vsub.f32 %v3080_v45, %v897_v0  ;;  %v917_v44 = vrot.slane %v884_v41, %v916_v2  ;;  %v939_v35 = vsub.f32 %v3098_v31, %v913_v43 }
 0x2c1   : > { %2393 = vpow2.f32 %v944_v58  ;;  %v964_v56 = vmul.f32 1.442695, %v937_v7  ;;  %v931_v57 = vsub.f32 %v3082_v46, %v897_v0  ;;  %v932_v41 = vsub.f32 %v3084_v47, %v901_v33 }
 0x2c2   : > { %2395 = vpow2.f32 %v956_v63  ;;  %v950_v52 = vmul.f32 1.442695, %v930_v36  ;;  %v941_v45 = vsub.f32 %v3110_v60, %v917_v44  ;;  %v968_v42 = vmul.f32 1.442695, %v939_v35 }
 0x2c3   : > { %2397 = vpow2.f32 %v946_v48  ;;  %v952_v31 = vmul.f32 1.442695, %v931_v57  ;;  %v934_v60 = vsub.f32 %v3088_v49, %v905_v55  ;;  %v954_v0 = vmul.f32 1.442695, %v932_v41 }
 0x2c4   : > { %2399 = vpow2.f32 %v960_v30  ;;  %v972_v46 = vmul.f32 1.442695, %v941_v45  ;;  %v936_v47 = vsub.f32 %v3092_v51, %v909_v62  ;;  %v938_v49 = vsub.f32 %v3096_v53, %v913_v43 }
 0x2c5   : > { %2401 = vpow2.f32 %v948_v50  ;;  %v958_v33 = vmul.f32 1.442695, %v934_v60  ;;  %v940_v51 = vsub.f32 %v3108_v59, %v917_v44 }
 0x2c6   : > { %2403 = vpow2.f32 %v964_v56  ;;  %v962_v55 = vmul.f32 1.442695, %v936_v47  ;;  %v966_v62 = vmul.f32 1.442695, %v938_v49 }
 0x2c7   : > { %2405 = vpow2.f32 %v950_v52  ;;  %v970_v53 = vmul.f32 1.442695, %v940_v51 }
 0x2c8   : > { %2407 = vpow2.f32 %v968_v42 }
 0x2c9   : > { %2409 = vpow2.f32 %v952_v31 }
 0x2ca   : > { %v3182_v37 = vpop.eup %2391  ;;  %2411 = vpow2.f32 %v972_v46 }
 0x2cb   : > { %991 = vperm.xlu1 %2390, %v3182_v37   ;;  %v3189_v58 = vpop.eup %2393  ;;  %2413 = vpow2.f32 %v954_v0 }
 0x2cc   : > { %v3194_v63 = vpop.eup %2395  ;;  %2415 = vpow2.f32 %v958_v33 }
 0x2cd   : > { %v3196_v1 = vpop.eup %2397  ;;  %1012 = vperm.xlu0 %2389, %v3194_v63   ;;  %2417 = vpow2.f32 %v962_v55 }
 0x2ce   : > { %v3201_v48 = vpop.eup %2399  ;;  %2419 = vpow2.f32 %v966_v62 }
 0x2cf   : > { %994 = vperm.xlu1 %2390, %v3189_v58   ;;  %v3203_v7 = vpop.eup %2401  ;;  %2421 = vpow2.f32 %v970_v53 }
 0x2d0   : > { %v3208_v30 = vpop.eup %2403 }
 0x2d1   : > { %1018 = vperm.xlu0 %2389, %v3201_v48   ;;  %v3210_v36 = vpop.eup %2405 }
 0x2d2   : > { %v3215_v50 = vpop.eup %2407 }
 0x2d3   : > { %997 = vperm.xlu1 %2390, %v3196_v1   ;;  %v3217_v35 = vpop.eup %2409 }
 0x2d4   : > { %v3222_v56 = vpop.eup %2411 }
 0x2d5   : > { %1024 = vperm.xlu0 %2389, %v3208_v30   ;;  %v3224_v57 = vpop.eup %2413 }
 0x2d6   : > { %v3228_v43 = vpop.eup %2415 }
 0x2d7   : > { %1000 = vperm.xlu1 %2390, %v3203_v7   ;;  %v3231_v52 = vpop.eup %2417 }
 0x2d8   : > { %v3234_v59 = vpop.eup %2419 }
 0x2d9   : > { %1030 = vperm.xlu0 %2389, %v3215_v50   ;;  %v3237_v44 = vpop.eup %2421 }
 0x2db   : > { %1003 = vperm.xlu1 %2390, %v3210_v36  }
 0x2dd   : > { %1036 = vperm.xlu0 %2389, %v3222_v56  }
 0x2df   : > { %1006 = vperm.xlu1 %2390, %v3217_v35  }
 0x2e3   : > { %1009 = vperm.xlu1 %2390, %v3224_v57  }
 0x2e7   : > { %1015 = vperm.xlu1 %2390, %v3228_v43  }
 0x2eb   : > { %1021 = vperm.xlu1 %2390, %v3231_v52  }
 0x2ef   : > { %1027 = vperm.xlu1 %2390, %v3234_v59  }
 0x2f3   : > { %1033 = vperm.xlu1 %2390, %v3237_v44  }
 0x34a   : > { %v992_v45 = vpop.permute.xlu1 %991 }
 0x34b   : > { %v1041_v61 = vrot.slane %v992_v45, %v3067_v38 }
 0x34c   : > { %v1013_v46 = vpop.permute.xlu0 %1012 }
 0x34d   : > { %v1072_v11 = vrot.slane %v1013_v46, %v3070_v39 }
 0x34e   : > { %v995_v42 = vpop.permute.xlu1 %994 }
 0x34f   : > { %v1045_v25 = vrot.slane %v995_v42, %v3070_v39 }
 0x350   : > { %v1019_v0 = vpop.permute.xlu0 %1018 }
 0x352   : > { %v998_v41 = vpop.permute.xlu1 %997 }
 0x353   : > { %v1050_v24 = vrot.slane %v998_v41, %v3067_v38  ;;  %v1046_v41 = vsel %vm801_vm1, %v1045_v25, %v1041_v61 }
 0x354   : > { %v1025_v49 = vpop.permute.xlu0 %1024 }
 0x356   : > { %v1001_v31 = vpop.permute.xlu1 %1000 }
 0x357   : > { %v1054_v51 = vrot.slane %v1001_v31, %v3070_v39 }
 0x358   : > { %v1031_v62 = vpop.permute.xlu0 %1030 }
 0x359   : > { %v1055_v31 = vsel %vm801_vm1, %v1054_v51, %v1050_v24  ;;  %v1099_v46 = vrot.slane %v1031_v62, %v3070_v39 }
 0x35a   : > { %v1004_v60 = vpop.permute.xlu1 %1003  ;;  %v1110_v45 = vsel %vm866_vm2, %v1055_v31, %v1046_v41 }
 0x35b   : > { %v1059_v16 = vrot.slane %v1004_v60, %v3067_v38 }
 0x35c   : > { %v1037_v24 = vpop.permute.xlu0 %1036 }
 0x35e   : > { %v1007_v47 = vpop.permute.xlu1 %1006 }
 0x35f   : > { %v1063_v53 = vrot.slane %v1007_v47, %v3070_v39  ;;  %v1081_v47 = vrot.slane %v1019_v0, %v3070_v39 }
 0x361   : > { %v1064_v42 = vsel %vm801_vm1, %v1063_v53, %v1059_v16 }
 0x362   : > { %v1010_v33 = vpop.permute.xlu1 %1009  ;;  %v1111_v0 = vsel %vm868_vm3, %v1064_v42, %v1110_v45 }
 0x363   : > { %v1068_v20 = vrot.slane %v1010_v33, %v3067_v38  ;;  %v1090_v33 = vrot.slane %v1025_v49, %v3070_v39 }
 0x365   : > { %v1073_v60 = vsel %vm801_vm1, %v1072_v11, %v1068_v20  ;;  %v1108_v11 = vrot.slane %v1037_v24, %v3070_v39  ;;  %v2643_v24 = vmov 0.0|0.0  }
 0x366   : > { %v1016_v55 = vpop.permute.xlu1 %1015  ;;  %v1112_v51 = vsel %vm870_vm4, %v1073_v60, %v1111_v0  ;;  %2288 = vmatprep.subr.bf16.mxu1 %v2643_v24 }
 0x367   : > { %v1077_v15 = vrot.slane %v1016_v55, %v3067_v38 }
 0x36a   : > { %v1022_v28 = vpop.permute.xlu1 %1021 }
 0x36b   : > { %v1086_v54 = vrot.slane %v1022_v28, %v3067_v38  ;;  %v1082_v28 = vsel %vm801_vm1, %v1081_v47, %v1077_v15 }
 0x36c   : > { %v1113_v20 = vsel %vm872_vm5, %v1082_v28, %v1112_v51 }
 0x36d   : > { %v1091_v16 = vsel %vm801_vm1, %v1090_v33, %v1086_v54 }
 0x36e   : > { %v1028_v4 = vpop.permute.xlu1 %1027  ;;  %v1114_v49 = vsel %vm874_vm6, %v1091_v16, %v1113_v20 }
 0x36f   : > { %v1095_v55 = vrot.slane %v1028_v4, %v3067_v38 }
 0x371   : > { %v1100_v25 = vsel %vm801_vm1, %v1099_v46, %v1095_v55 }
 0x372   : > { %v1034_v61 = vpop.permute.xlu1 %1033  ;;  %v1115_v15 = vsel %vm876_vm7, %v1100_v25, %v1114_v49 }
 0x373   : > { %v1104_v4 = vrot.slane %v1034_v61, %v3067_v38 }
 0x375   : > { %v1109_v62 = vsel %vm801_vm1, %v1108_v11, %v1104_v4  ;;  %v3515_v11 = vsub.s32 6, %v3064_v34 }
 0x376   : > { %v1116_v53 = vsel %vm878_vm8, %v1109_v62, %v1115_v15 }
 0x377   : > { %v1118_v54 = vsel %vm881_vm9, %v1116_v53, 0.0 }
 0x378   : > { %1119 = vadd.xlane.f32.xlu1 %v1118_v54 }
 0x405   : > { %v1120_v31 = vpop.xlane.xlu1 %1119 }
 0x406   : > { %v1141_v47 = vrot.slane %v1120_v31, %v904_v32  ;;  %v1125_v42 = vrot.slane %v1120_v31, %v888_v3  ;;  %v1153_v41 = vrot.slane %v1120_v31, %v916_v2  ;;  %v1129_v33 = vrot.slane %v1120_v31, %v892_v5 }
 0x407   : > { %v1133_v32 = vrot.slane %v1120_v31, %v896_v40  ;;  %v3513_v40 = vsub.s32 3, %v3064_v34  ;;  %v1149_v20 = vrot.slane %v1120_v31, %v3515_v11  ;;  %v3522_v11 = vpack.c.bf16 %v2961_v27, %v2958_v26 }
 0x408   : > { %2423 = vrcp.f32 %v1141_v47 }
 0x409   : > { %2425 = vrcp.f32 %v1125_v42  ;;  %v1137_v0 = vrot.slane %v1120_v31, %v3513_v40  ;;  %v3520_v40 = vpack.c.bf16 %v2945_v21, %v2940_v19 }
 0x40a   : > { %2427 = vrcp.f32 %v1153_v41  ;;  %v3517_v41 = vpack.c.bf16 %v2921_v12, %v2916_v10 }
 0x40b   : > { %2429 = vrcp.f32 %v1129_v33 }
 0x40c   : > { %2431 = vrcp.f32 %v1133_v32 }
 0x40d   : > { %2433 = vrcp.f32 %v1137_v0 }
 0x412   : > { %v2424_v60 = vpop.eup %2423 }
 0x413   : > { %v2426_v55 = vpop.eup %2425  ;;  %v1176_v46 = vmul.f32 %v2424_v60, %v3201_v48  ;;  %v2289_v48 = vpack.c.bf16 %v2966_v29, %v2905_v6  ;;  %v3514_v29 = vsub.s32 5, %v3064_v34 }
 0x414   : > { %v2428_v45 = vpop.eup %2427  ;;  %v1163_v3 = vmul.f32 %v2426_v55, %v3182_v37  ;;  %v1164_v5 = vmul.f32 %v2426_v55, %v3189_v58 }
 0x415   : > { %1548 = vperm.xlu1 %2390, %v1176_v46   ;;  %v1184_v2 = vmul.f32 %v2428_v45, %v3237_v44  ;;  %v2430_v28 = vpop.eup %2429  ;;  %2290 = vmatpush3.bf16.msra.mxu1 %v2289_v48  ;;  %v2645_v44 = vmov 0.0   ;;  %v3518_v46 = vpack.c.bf16 %v2927_v14, %v2924_v13  ;;  %v3519_v14 = vpack.c.bf16 %v2937_v18, %v2934_v17 }
 0x416   : > { %1189 = vperm.xlu0 %2389, %v1163_v3   ;;  %v1166_v37 = vmul.f32 %v2430_v28, %v3196_v1  ;;  %2228 = vmatprep.mubr.msk.f32.mxu1 %vm2644_vm10, %v2645_v44  ;;  %v1167_v58 = vmul.f32 %v2430_v28, %v3203_v7  ;;  %v2432_v16 = vpop.eup %2431  ;;  %v1145_v1 = vrot.slane %v1120_v31, %v3514_v29 }
 0x417   : > { %2291 = vmatprep.subr.bf16.mxu1 %v2643_v24  ;;  %v1169_v6 = vmul.f32 %v2432_v16, %v3210_v36  ;;  %v1170_v51 = vmul.f32 %v2432_v16, %v3217_v35  ;;  %v2434_v25 = vpop.eup %2433  ;;  %v1175_v36 = vmul.f32 %v2424_v60, %v3228_v43  ;;  %v3521_v16 = vpack.c.bf16 %v2951_v23, %v2948_v22 }
 0x418   : > { %2435 = vrcp.f32 %v1145_v1  ;;  %v1172_v61 = vmul.f32 %v2434_v25, %v3224_v57  ;;  %v1173_v7 = vmul.f32 %v2434_v25, %v3194_v63  ;;  %v1185_v63 = vmul.f32 %v2428_v45, %v3222_v56 }
 0x419   : > { %1812 = vperm.xlu1 %2390, %v1184_v2   ;;  %2437 = vrcp.f32 %v1149_v20 }
 0x41a   : > { %1192 = vperm.xlu0 %2389, %v1164_v5  }
 0x41e   : > { %1278 = vperm.xlu0 %2389, %v1166_v37  }
 0x422   : > { %1281 = vperm.xlu0 %2389, %v1167_v58   ;;  %v2436_v4 = vpop.eup %2435 }
 0x423   : > { %v1178_v49 = vmul.f32 %v2436_v4, %v3231_v52  ;;  %v1179_v35 = vmul.f32 %v2436_v4, %v3208_v30  ;;  %v2438_v62 = vpop.eup %2437 }
 0x424   : > { %v1181_v57 = vmul.f32 %v2438_v62, %v3234_v59  ;;  %v1182_v34 = vmul.f32 %v2438_v62, %v3215_v50  ;;  %v3516_v59 = vpack.c.bf16 %v2913_v9, %v2910_v8 }
 0x426   : > { %1367 = vperm.xlu0 %2389, %v1169_v6  }
 0x42a   : > { %1370 = vperm.xlu0 %2389, %v1170_v51  }
 0x42e   : > { %1456 = vperm.xlu0 %2389, %v1172_v61  }
 0x432   : > { %1459 = vperm.xlu0 %2389, %v1173_v7  }
 0x436   : > { %1545 = vperm.xlu0 %2389, %v1175_v36  }
 0x43a   : > { %1634 = vperm.xlu0 %2389, %v1178_v49  }
 0x43e   : > { %1637 = vperm.xlu0 %2389, %v1179_v35  }
 0x442   : > { %1723 = vperm.xlu0 %2389, %v1181_v57  }
 0x446   : > { %1726 = vperm.xlu0 %2389, %v1182_v34  }
 0x44a   : > { %1815 = vperm.xlu0 %2389, %v1185_v63  }
 0x494   : > { %v1549_v45 = vpop.permute.xlu1 %1548 }
 0x495   : > { %v1190_v15 = vpop.permute.xlu0 %1189  ;;  %v1557_v5 = vrot.slane %v1549_v45, %v3070_v39 }
 0x496   : > { %v1197_v53 = vrot.slane %v1190_v15, %v3067_v38 }
 0x498   : > { %v1813_v29 = vpop.permute.xlu1 %1812 }
 0x499   : > { %v1193_v43 = vpop.permute.xlu0 %1192 }
 0x49a   : > { %v1201_v52 = vrot.slane %v1193_v43, %v3070_v39 }
 0x49c   : > { %v1202_v54 = vsel %vm801_vm1, %v1201_v52, %v1197_v53 }
 0x49d   : > { %2229 = vmatmul.mubr.msk.f32.vlgmr.msra.gmra.mrb[0].mxu1 %vm881_vm9, %v1202_v54  ;;  %v1279_v30 = vpop.permute.xlu0 %1278 }
 0x49e   : > { %2293 = vmatpush3.bf16.msra.mxu1 %v3516_v59  ;;  %2235 = vmatprep.mubr.msk.f32.mxu1 %vm2644_vm10, %v2645_v44  ;;  %v1286_v56 = vrot.slane %v1279_v30, %v3067_v38 }
 0x49f   : > { %2294 = vmatprep.subr.bf16.mxu1 %v2643_v24 }
 0x4a1   : > { %v1282_v50 = vpop.permute.xlu0 %1281 }
 0x4a2   : > { %v1290_v31 = vrot.slane %v1282_v50, %v3070_v39 }
 0x4a4   : > { %v1291_v47 = vsel %vm801_vm1, %v1290_v31, %v1286_v56 }
 0x4a5   : > { %2236 = vmatmul.mubr.msk.f32.vlgmr.msra.gmra.mrb[2].mxu1 %vm881_vm9, %v1291_v47  ;;  %v1368_v42 = vpop.permute.xlu0 %1367  ;;  %v1907_v1 = vsel %vm866_vm2, %v1291_v47, %v1202_v54 }
 0x4a6   : > { %2296 = vmatpush3.bf16.msra.mxu1 %v3517_v41  ;;  %2242 = vmatprep.mubr.msk.f32.mxu1 %vm2644_vm10, %v2645_v44  ;;  %v1375_v9 = vrot.slane %v1368_v42, %v3067_v38 }
 0x4a7   : > { %2297 = vmatprep.subr.bf16.mxu1 %v2643_v24 }
 0x4a9   : > { %v1371_v8 = vpop.permute.xlu0 %1370 }
 0x4aa   : > { %v1379_v33 = vrot.slane %v1371_v8, %v3070_v39 }
 0x4ac   : > { %v1380_v60 = vsel %vm801_vm1, %v1379_v33, %v1375_v9 }
 0x4ad   : > { %2243 = vmatmul.mubr.msk.f32.vlgmr.msra.gmra.mrb[4].mxu1 %vm881_vm9, %v1380_v60  ;;  %v1457_v55 = vpop.permute.xlu0 %1456  ;;  %v1908_v51 = vsel %vm868_vm3, %v1380_v60, %v1907_v1 }
 0x4ae   : > { %2299 = vmatpush3.bf16.msra.mxu1 %v3518_v46  ;;  %2249 = vmatprep.mubr.msk.f32.mxu1 %vm2644_vm10, %v2645_v44  ;;  %v1464_v12 = vrot.slane %v1457_v55, %v3067_v38 }
 0x4af   : > { %2300 = vmatprep.subr.bf16.mxu1 %v2643_v24 }
 0x4b1   : > { %v1460_v10 = vpop.permute.xlu0 %1459 }
 0x4b2   : > { %v1468_v32 = vrot.slane %v1460_v10, %v3070_v39 }
 0x4b4   : > { %v1469_v3 = vsel %vm801_vm1, %v1468_v32, %v1464_v12 }
 0x4b5   : > { %2250 = vmatmul.mubr.msk.f32.vlgmr.msra.gmra.mrb[6].mxu1 %vm881_vm9, %v1469_v3  ;;  %v1546_v2 = vpop.permute.xlu0 %1545  ;;  %v1909_v22 = vsel %vm870_vm4, %v1469_v3, %v1908_v51 }
 0x4b6   : > { %v1553_v13 = vrot.slane %v1546_v2, %v3067_v38  ;;  %2302 = vmatpush3.bf16.msra.mxu1 %v3519_v14  ;;  %2256 = vmatprep.mubr.msk.f32.mxu1 %vm2644_vm10, %v2645_v44 }
 0x4b7   : > { %2303 = vmatprep.subr.bf16.mxu1 %v2643_v24 }
 0x4b8   : > { %v1558_v28 = vsel %vm801_vm1, %v1557_v5, %v1553_v13 }
 0x4b9   : > { %2257 = vmatmul.mubr.msk.f32.vlgmr.msra.gmra.mrb[8].mxu1 %vm881_vm9, %v1558_v28  ;;  %v1635_v48 = vpop.permute.xlu0 %1634  ;;  %v1910_v61 = vsel %vm872_vm5, %v1558_v28, %v1909_v22 }
 0x4ba   : > { %2305 = vmatpush3.bf16.msra.mxu1 %v3520_v40  ;;  %2263 = vmatprep.mubr.msk.f32.mxu1 %vm2644_vm10, %v2645_v44  ;;  %v1642_v18 = vrot.slane %v1635_v48, %v3067_v38 }
 0x4bb   : > { %2306 = vmatprep.subr.bf16.mxu1 %v2643_v24 }
 0x4bd   : > { %v1638_v17 = vpop.permute.xlu0 %1637 }
 0x4be   : > { %v1646_v0 = vrot.slane %v1638_v17, %v3070_v39 }
 0x4c0   : > { %v1647_v37 = vsel %vm801_vm1, %v1646_v0, %v1642_v18 }
 0x4c1   : > { %2264 = vmatmul.mubr.msk.f32.vlgmr.msra.gmra.mrb[10].mxu1 %vm881_vm9, %v1647_v37  ;;  %v1724_v58 = vpop.permute.xlu0 %1723  ;;  %v1911_v7 = vsel %vm874_vm6, %v1647_v37, %v1910_v61 }
 0x4c2   : > { %2308 = vmatpush3.bf16.msra.mxu1 %v3521_v16  ;;  %2270 = vmatprep.mubr.msk.f32.mxu1 %vm2644_vm10, %v2645_v44  ;;  %v1731_v21 = vrot.slane %v1724_v58, %v3067_v38 }
 0x4c3   : > { %2309 = vmatprep.subr.bf16.mxu1 %v2643_v24  ;;  %v1820_v24 = vrot.slane %v1813_v29, %v3067_v38 }
 0x4c5   : > { %v1727_v19 = vpop.permute.xlu0 %1726 }
 0x4c6   : > { %v1735_v6 = vrot.slane %v1727_v19, %v3070_v39 }
 0x4c8   : > { %v1736_v25 = vsel %vm801_vm1, %v1735_v6, %v1731_v21 }
 0x4c9   : > { %2271 = vmatmul.mubr.msk.f32.vlgmr.msra.gmra.mrb[12].mxu1 %vm881_vm9, %v1736_v25  ;;  %v1816_v23 = vpop.permute.xlu0 %1815  ;;  %v1912_v36 = vsel %vm876_vm7, %v1736_v25, %v1911_v7 }
 0x4ca   : > { %2311 = vmatpush3.bf16.msra.mxu1 %v3522_v11  ;;  %v1824_v20 = vrot.slane %v1816_v23, %v3070_v39  ;;  %2277 = vmatprep.mubr.msk.f32.mxu1 %vm2644_vm10, %v2645_v44 }
 0x4cc   : > { %v1825_v4 = vsel %vm801_vm1, %v1824_v20, %v1820_v24 }
 0x4cd   : > { %v1913_v38 = vsel %vm878_vm8, %v1825_v4, %v1912_v36  ;;  %2278 = vmatmul.mubr.msk.f32.vlgmr.msra.gmra.mrb[14].mxu1 %vm881_vm9, %v1825_v4 }
 0x4ce   : > { %1915 = vst.msk [vmem:[%s364_s17] sm:$0xff] %vm881_vm9, %v1913_v38 }
 0x4cf   : > { %2540 = shalt.err (!%p2537_p6)
}
 0x4d0   : > { %s2541_s18 = scalar_lea.hbm %s3398_s15, 128  ;;  %s2545_s21 = scalar_lea.hbm %s3485_s7, 256 }
 0x4d1   : > { %p2542_p8 = scmp.ne.s32.totalorder %s3398_s15, %s2541_s18  ;;  %p2546_p4 = scmp.lt.u32.totalorder %s3398_s15, %s3485_s7 }
 0x4d2   : > { %p2547_p11 = scmp.lt.u32.totalorder %s2545_s21, %s2541_s18  ;;  %p2549_p3 = scmp.lt.u32.totalorder %s2541_s18, %s3398_s15 }
 0x4d3   : > { %p2543_p10 = pnand %p2542_p8, %p2787_p12 }
 0x4d4   : > { %p2548_p13 = por %p2547_p11, %p2546_p4 }
 0x4d5   : > { %p2544_p0 = pneg %p2543_p10 }
 0x4d6   : > { %p2550_p7 = por %p2549_p3, %p2548_p13 }
 0x4d8   : > { %p2551_p9 = pnand %p2550_p7, %p2544_p0 }
 0x4da   : > { %2554 = shalt.err (!%p2551_p9)
}
 0x4db   : > { %2321 = dma.vmem_to_hbm [thread:$0]  (%p2787_p12), %s1952_s28, 128, %s3398_s15, %s1922_s11   ;;  %vm1898_vm11 = vcmask 253952  }
 0x4dc   : > { %s357_s17 = scalar_lea.vmem [#allocation9], %s2891_s10  ;;  %s3433_s15 = scalar_lea.hbm %s3484_s6, %s2147_s2 }
 0x4dd   : > { %s1935_s10 = sshll.u32 %s357_s17, 4  ;;  %s1917_s28 = scalar_lea.sflag [#allocation5], %s2879_s20  ;;  %s3425_s10 = int_to_ptr.vmem [resolvable:$true] %s1935_s10 }
 0x4de   : > { %s2555_s11 = scalar_lea.vmem %s3425_s10, 128  ;;  %s2647_s22 = smov [#allocation9]  }
 0x4df   : > { %p2556_p1 = scmp.ne.s32.totalorder %s3425_s10, %s2555_s11  ;;  %s2559_s30 = sshll.u32 %s2647_s22, 4  ;;  %s2560_s30 = int_to_ptr.vmem [resolvable:$false] %s2559_s30 }
 0x4e0   : > { %s2561_s13 = scalar_lea.vmem %s2560_s30, 256  ;;  %p2562_p6 = scmp.lt.s32.totalorder %s3425_s10, %s2560_s30 }
 0x4e1   : > { %p2557_p5 = pnand %p2556_p1, %p2787_p12  ;;  %p2563_p8 = scmp.lt.s32.totalorder %s2561_s13, %s2555_s11 }
 0x4e3   : > { %p2558_p2 = pneg %p2557_p5  ;;  %p2564_p10 = por %p2563_p8, %p2562_p6 }
 0x4e5   : > { %p2565_p0 = pnand %p2564_p10, %p2558_p2 }
 0x570   : > { %v1271_v26 = vpop.f32.mrb[0].mxu1 }
 0x571   : > { %1899 = vst.msk [vmem:[%s357_s17] sm:$0x1] %vm1898_vm11, %v1271_v26  ;;  %v2230_v27 = vpop.f32.mrb[1].mxu1 }
 0x578   : > { %v1360_v39 = vpop.f32.mrb[2].mxu1 }
 0x579   : > { %1900 = vst.msk [vmem:[%s357_s17 + $0x1] sm:$0x1] %vm1898_vm11, %v1360_v39  ;;  %v2237_v44 = vpop.f32.mrb[3].mxu1 }
 0x580   : > { %v1449_v49 = vpop.f32.mrb[4].mxu1 }
 0x581   : > { %1901 = vst.msk [vmem:[%s357_s17 + $0x2] sm:$0x1] %vm1898_vm11, %v1449_v49  ;;  %v2244_v35 = vpop.f32.mrb[5].mxu1 }
 0x588   : > { %v1538_v62 = vpop.f32.mrb[6].mxu1 }
 0x589   : > { %1902 = vst.msk [vmem:[%s357_s17 + $0x3] sm:$0x1] %vm1898_vm11, %v1538_v62  ;;  %v2251_v57 = vpop.f32.mrb[7].mxu1 }
 0x58c   : > { %v1627_v34 = vpop.f32.mrb[8].mxu1 }
 0x58d   : > { %1903 = vst.msk [vmem:[%s357_s17 + $0x4] sm:$0x1] %vm1898_vm11, %v1627_v34  ;;  %v2258_v63 = vpop.f32.mrb[9].mxu1 }
 0x594   : > { %v1716_v15 = vpop.f32.mrb[10].mxu1 }
 0x595   : > { %1904 = vst.msk [vmem:[%s357_s17 + $0x5] sm:$0x1] %vm1898_vm11, %v1716_v15  ;;  %v2265_v43 = vpop.f32.mrb[11].mxu1 }
 0x59c   : > { %v1805_v53 = vpop.f32.mrb[12].mxu1 }
 0x59d   : > { %1905 = vst.msk [vmem:[%s357_s17 + $0x6] sm:$0x1] %vm1898_vm11, %v1805_v53  ;;  %v2272_v52 = vpop.f32.mrb[13].mxu1 }
 0x5a0   : > { %v1894_v54 = vpop.f32.mrb[14].mxu1 }
 0x5a1   : > { %1906 = vst.msk [vmem:[%s357_s17 + $0x7] sm:$0x1] %vm1898_vm11, %v1894_v54  ;;  %v2279_v30 = vpop.f32.mrb[15].mxu1 }
 0x5a2   : > { %2568 = shalt.err (!%p2565_p0)
}
 0x5a3   : > { %s2569_s5 = scalar_lea.hbm %s3433_s15, 128  ;;  %s2573_s18 = scalar_lea.hbm %s3484_s6, 256 }
 0x5a4   : > { %p2570_p4 = scmp.ne.s32.totalorder %s3433_s15, %s2569_s5  ;;  %p2574_p3 = scmp.lt.u32.totalorder %s3433_s15, %s3484_s6 }
 0x5a5   : > { %p2575_p7 = scmp.lt.u32.totalorder %s2573_s18, %s2569_s5  ;;  %p2577_p1 = scmp.lt.u32.totalorder %s2569_s5, %s3433_s15 }
 0x5a6   : > { %p2571_p11 = pnand %p2570_p4, %p2787_p12 }
 0x5a7   : > { %p2576_p9 = por %p2575_p7, %p2574_p3 }
 0x5a8   : > { %p2572_p13 = pneg %p2571_p11 }
 0x5a9   : > { %p2578_p5 = por %p2577_p1, %p2576_p9 }
 0x5ab   : > { %p2579_p2 = pnand %p2578_p5, %p2572_p13 }
 0x5ad   : > { %2582 = shalt.err (!%p2579_p2)
}
 0x5ae   : > { %s2648_s21 = smov 16   ;;  %s2649_s16 = smov 1  }
 0x5af   : > { %2320 = dma.vmem_to_hbm [thread:$0]  (%p2787_p12), %s3425_s10, 128, %s3433_s15, %s1917_s28, %s2648_s21, %s2648_s21, %s2649_s16  }
 0x5b0 PF: > { %s1963_s23 = sand.u32 1, %s2621_s26   ;;  %p3523_p6 = scmp.ne.s32.totalorder %s3498_s9, 0 }
 0x5b1   : > { %p3524_p8 = scmp.ge.s32.totalorder %s2633_s29, 2  ;;  %s1964_s17 = scalar_lea.sflag [#allocation5], %s1963_s23 }
 0x5b3   : > { %p2336_p10 = pnand %p3524_p8, %p3523_p6 }
 0x5b5   : > { %2612 = dma.done.wait (!%p2336_p10), %s1964_s17, 128  }
 0x5b6   : > { %2614 = vsyncadd (!%p2336_p10), %s1964_s17, 4294967168  ;;  %s1973_s25 = scalar_lea.sflag [#allocation11], %s1963_s23 }
 0x5b7   : > { %2616 = dma.done.wait (!%p2336_p10), %s1973_s25, 128  }
 0x5b8   : > { %2618 = vsyncadd (!%p2336_p10), %s1973_s25, 4294967168  ;;  %s3525_s12 = sld [smem:[#allocation17_spill]]  ;;  %s3526_s28 = sld [smem:[#allocation18_spill]] }
 0x5b9   : > { %p29_p12 = scmp.ge.s32.totalorder %s2749_s14, 4   ;;  %s3527_s26 = smov %s2625_s27 }
 0x5ba   : > { %s3529_s29 = smov %s2749_s14 }
 0x5bb   :  { %31 = sbr.rel (!%p29_p12) target bundleno = 12 (0xc), region = 123 }
 0x5be   : > { %s3528_s27 = smov %s3525_s12 }
 0x5c2   :  { %1978 = vsyncpa [#allocation4], 1 }
 0x5c3   :  { %1980 = vsyncpa [#allocation4 + $0x1], 1 }
 0x5c4   :  { %1981 = vsyncpa [#allocation7], 1 }
 0x5c5   :  { %1983 = vsyncpa [#allocation7 + $0x1], 1 }
 0x5c6   :  { %1984 = vsyncpa [#allocation5], 1 }
 0x5c7   :  { %1986 = vsyncpa [#allocation5 + $0x1], 1 }
 0x5c8   :  { %1987 = vsyncpa [#allocation11], 1 }
 0x5c9   :  { %1989 = vsyncpa [#allocation11 + $0x1], 1 }

</bundles_post_ra>
